<compile_context>
chip_gen: v6e
topology: v6e:2x2x1
jax: 0.10.0
libtpu: 0.0.40
codegen_flags: <defaults>
</compile_context>

<pallas_src>
import functools
from typing import NamedTuple, Optional

import jax
import jax.numpy as jnp
import numpy as np
from jax.experimental import pallas as pl
from jax.experimental.pallas import tpu as pltpu


# --------------------------------------------------------------------------
# Kernel
# --------------------------------------------------------------------------
def _lora_linear_kernel(x_ref, w_ref, a_ref, b_ref, *rest, has_bias, tk):
    if has_bias:
        bias_ref, o_ref, acc_ref, xa_ref = rest
    else:
        bias_ref = None
        o_ref, acc_ref, xa_ref = rest

    k = pl.program_id(2)
    nk = pl.num_programs(2)

    @pl.when(k == 0)
    def _init():
        # Initialize the accumulator directly with the (broadcast) bias so no
        # extra VPU add is needed in the epilogue.
        if has_bias:
            acc_ref[...] = jnp.broadcast_to(bias_ref[...], acc_ref.shape)
        else:
            acc_ref[...] = jnp.zeros_like(acc_ref)
        xa_ref[...] = jnp.zeros_like(xa_ref)

    x_tile = x_ref[...]

    # Base GEMM tile: (tm, tk) @ (tk, tn) -> (tm, tn).  Weight was
    # pre-transposed to (K, N) in the wrapper, so this is a plain NN dot.
    acc_ref[...] += jnp.dot(x_tile, w_ref[...],
                            preferred_element_type=jnp.float32)

    # Fused LoRA-A projection: xa += x_tile @ (scale*A)^T[k-th K-slice].
    # a_ref holds the full (Kp, R) array resident in VMEM (fetched once).
    a_start = pl.multiple_of(k * tk, 128)
    a_tile = a_ref[pl.ds(a_start, tk), :]
    xa_ref[...] += jnp.dot(x_tile, a_tile,
                           preferred_element_type=jnp.float32)

    @pl.when(k == nk - 1)
    def _finalize():
        # Rank-R LoRA epilogue, accumulated straight into the f32 scratch,
        # single fused store to the output tile.
        b_tile = b_ref[...]
        acc_ref[...] += jnp.dot(xa_ref[...].astype(b_tile.dtype), b_tile,
                                preferred_element_type=jnp.float32)
        o_ref[...] = acc_ref[...].astype(o_ref.dtype)


# --------------------------------------------------------------------------
# Parameter preparation (hoisted out of the hot path; reuse across calls)
# --------------------------------------------------------------------------
def _round_up(x, m):
    return (x + m - 1) // m * m


def _pad2d(a, rows, cols):
    pr, pc = rows - a.shape[0], cols - a.shape[1]
    if pr == 0 and pc == 0:
        return a
    return jnp.pad(a, ((0, pr), (0, pc)))


class LoRALinearParams(NamedTuple):
    w_t: jax.Array                 # (Kp, Np)  compute_dtype, base_weight^T padded
    a_t: jax.Array                 # (Kp, R)   compute_dtype, (scale * lora_A)^T padded
    b_t: jax.Array                 # (R, Np)   compute_dtype, lora_B^T padded
    bias: Optional[jax.Array]      # (1, Np)   float32, or None
    out_features: int
    in_features: int
    tn: int
    tk: int


def prepare_lora_linear(base_weight, base_bias, lora_A, lora_B, scale, *,
                        compute_dtype=jnp.bfloat16, tn=512, tk=1024):
    """One-time cast / transpose / pad of the weights.

    base_weight: (out_features, in_features)
    base_bias:   (out_features,) or None
    lora_A:      (rank, in_features)
    lora_B:      (out_features, rank)
    """
    out_features, in_features = base_weight.shape
    rank = lora_A.shape[0]

    tn = min(tn, _round_up(out_features, 128))
    tk = min(tk, _round_up(in_features, 128))
    Np = _round_up(out_features, tn)
    Kp = _round_up(in_features, tk)
    R = _round_up(rank, 8)  # sublane-aligned rank (zero padding is exact)

    # Pre-transposed so the kernel does NN dots only (no in-kernel transpose).
    w_t = _pad2d(base_weight.T.astype(compute_dtype), Kp, Np)
    # Fold `scale` into A (works for traced scalars too; no float() cast).
    a_scaled = lora_A.astype(jnp.float32) * scale
    a_t = _pad2d(a_scaled.T.astype(compute_dtype), Kp, R)
    b_t = _pad2d(lora_B.T.astype(compute_dtype), R, Np)

    bias = None
    if base_bias is not None:
        bias = _pad2d(base_bias.astype(jnp.float32).reshape(1, -1), 1, Np)

    return LoRALinearParams(w_t, a_t, b_t, bias,
                            out_features, in_features, tn, tk)


# --------------------------------------------------------------------------
# Hot-path apply
# --------------------------------------------------------------------------
def lora_linear_apply(x, params: LoRALinearParams, *, tm=None,
                      vmem_limit_bytes=None):
    out_features, in_features = params.out_features, params.in_features
    tn, tk = params.tn, params.tk
    Kp, Np = params.w_t.shape
    R = params.a_t.shape[1]
    compute_dtype = params.w_t.dtype
    has_bias = params.bias is not None

    lead_shape = x.shape[:-1]
    out_dtype = x.dtype
    x2d = x.reshape(-1, in_features)
    m = x2d.shape[0]

    # M tile: one block up to 1024 rows (small-M regime -> fewer grid steps),
    # else 512-row blocks (large-M, compute-bound regime).
    if tm is None:
        tm = _round_up(m, 8) if m <= 1024 else 512
    tm = min(tm, _round_up(m, 8))
    Mp = _round_up(m, tm)

    xp = _pad2d(x2d.astype(compute_dtype), Mp, Kp)

    grid = (Mp // tm, Np // tn, Kp // tk)

    args = [xp, params.w_t, params.a_t, params.b_t]
    in_specs = [
        pl.BlockSpec((tm, tk), lambda i, j, k: (i, k)),    # x tile
        pl.BlockSpec((tk, tn), lambda i, j, k: (k, j)),    # W^T tile (NN dot)
        pl.BlockSpec((Kp, R), lambda i, j, k: (0, 0)),     # (scale*A)^T, resident
        pl.BlockSpec((R, tn), lambda i, j, k: (0, j)),     # B^T column block
    ]
    if has_bias:
        args.append(params.bias)
        in_specs.append(pl.BlockSpec((1, tn), lambda i, j, k: (0, j)))

    # VMEM estimate (double-buffered streams + scratch) -> explicit limit.
    cd = jnp.dtype(compute_dtype).itemsize
    od = jnp.dtype(out_dtype).itemsize
    vmem_est = (2 * (tm * tk * cd + tk * tn * cd + Kp * R * cd + R * tn * cd
                     + (tn * 4 if has_bias else 0) + tm * tn * od)
                + tm * tn * 4 + tm * R * 4)
    if vmem_limit_bytes is None:
        vmem_limit_bytes = int(min(max(vmem_est + (4 << 20), 16 << 20), 48 << 20))

    # Advisory cost hint for XLA's scheduler around the custom call.
    flops = 2.0 * Mp * Np * Kp + 2.0 * Mp * Kp * R + 2.0 * Mp * R * Np
    bytes_accessed = (Mp * Kp * cd * (Np // tn)      # x re-read per j block
                      + Kp * Np * cd * (Mp // tm)    # W^T re-read per i block
                      + Kp * R * cd + R * Np * cd    # LoRA factors
                      + Mp * Np * od)                # output
    cost = pl.CostEstimate(flops=int(flops), transcendentals=0,
                           bytes_accessed=int(bytes_accessed))

    kernel = functools.partial(_lora_linear_kernel, has_bias=has_bias, tk=tk)

    out = pl.pallas_call(
        kernel,
        out_shape=jax.ShapeDtypeStruct((Mp, Np), out_dtype),
        grid_spec=pltpu.PrefetchScalarGridSpec(
            num_scalar_prefetch=0,
            grid=grid,
            in_specs=in_specs,
            out_specs=pl.BlockSpec((tm, tn), lambda i, j, k: (i, j)),
            scratch_shapes=[
                pltpu.VMEM((tm, tn), jnp.float32),   # base-GEMM accumulator
                pltpu.VMEM((tm, R), jnp.float32),    # fused xa accumulator
            ],
        ),
        compiler_params=pltpu.CompilerParams(
            dimension_semantics=("parallel", "parallel", "arbitrary"),
            vmem_limit_bytes=vmem_limit_bytes),
        cost_estimate=cost,
    )(*args)

    return out[:m, :out_features].reshape(*lead_shape, out_features)


def lora_linear(x, base_weight, base_bias, lora_A, lora_B, scale, *,
                compute_dtype=jnp.bfloat16, tn=512, tk=1024, tm=None):
    """Convenience one-shot path (prepares weights, then applies)."""
    params = prepare_lora_linear(base_weight, base_bias, lora_A, lora_B, scale,
                                 compute_dtype=compute_dtype, tn=tn, tk=tk)
    return lora_linear_apply(x, params, tm=tm)


# --------------------------------------------------------------------------
# Self-test
# --------------------------------------------------------------------------
if __name__ == "__main__":
    # Small, module-consistent shapes.
    batch, in_features, out_features, rank = 8, 32, 64, 4
    scale = 2.0

    key = jax.random.PRNGKey(0)
    k_x, k_w, k_bias, k_a, k_b = jax.random.split(key, 5)

    x = jax.random.normal(k_x, (batch, in_features), dtype=jnp.float32)
    base_weight = jax.random.normal(k_w, (out_features, in_features),
                                    dtype=jnp.float32) * 0.1
    base_bias = jax.random.normal(k_bias, (out_features,), dtype=jnp.float32) * 0.1

    # lora_A: kaiming_uniform_ with a=sqrt(rank)  (as in _reset_parameters)
    gain = np.sqrt(2.0 / (1.0 + rank))          # a^2 = rank
    bound = gain * np.sqrt(3.0 / in_features)   # fan_in = in_features
    lora_A = jax.random.uniform(k_a, (rank, in_features), dtype=jnp.float32,
                                minval=-bound, maxval=bound)
    # Module inits lora_B to zeros (LoRA delta vanishes); use small non-zero
    # values so the LoRA path is actually exercised.
    lora_B = jax.random.normal(k_b, (out_features, rank), dtype=jnp.float32) * 0.05

    # Pure-JAX reference (merged-weight formulation, f32).
    w_ref = base_weight + scale * (lora_B @ lora_A)
    y_ref = x @ w_ref.T + base_bias
    y_ref_nobias = x @ w_ref.T

    # f32 compute path with HOISTED weight prep, reused across two calls.
    params32 = prepare_lora_linear(base_weight, base_bias, lora_A, lora_B,
                                   scale, compute_dtype=jnp.float32)
    y32 = jax.block_until_ready(lora_linear_apply(x, params32))
    np.testing.assert_allclose(np.asarray(y32), np.asarray(y_ref),
                               rtol=1e-4, atol=1e-4)
    y32_again = jax.block_until_ready(lora_linear_apply(x, params32))
    np.testing.assert_allclose(np.asarray(y32_again), np.asarray(y_ref),
                               rtol=1e-4, atol=1e-4)

    # No-bias path (skips the bias input stream entirely).
    y32_nb = jax.block_until_ready(
        lora_linear(x, base_weight, None, lora_A, lora_B, scale,
                    compute_dtype=jnp.float32))
    np.testing.assert_allclose(np.asarray(y32_nb), np.asarray(y_ref_nobias),
                               rtol=1e-4, atol=1e-4)

    # bf16 MXU inputs (default / performance path): looser tolerance.
    y16 = jax.block_until_ready(
        lora_linear(x, base_weight, base_bias, lora_A, lora_B, scale))
    np.testing.assert_allclose(np.asarray(y16).astype(np.float32),
                               np.asarray(y_ref), rtol=3e-2, atol=3e-2)

    # Leading-dims handling (x reshaped to (2, 4, in_features)).
    x3 = x.reshape(2, 4, in_features)
    y3 = jax.block_until_ready(
        lora_linear(x3, base_weight, base_bias, lora_A, lora_B, scale))
    np.testing.assert_allclose(np.asarray(y3).astype(np.float32),
                               np.asarray(y_ref).reshape(2, 4, out_features),
                               rtol=3e-2, atol=3e-2)

    print("KERNEL_OK")
</pallas_src>

<mosaic_0001>
module attributes {stable_mosaic.version = 11 : i64} {
  func.func @_lora_linear_kernel(%arg0: i32, %arg1: i32, %arg2: i32, %arg3: memref<8x128xf32, #tpu.memory_space<vmem>>, %arg4: memref<128x128xf32, #tpu.memory_space<vmem>>, %arg5: memref<128x8xf32, #tpu.memory_space<vmem>>, %arg6: memref<8x128xf32, #tpu.memory_space<vmem>>, %arg7: memref<1x128xf32, #tpu.memory_space<vmem>>, %arg8: memref<8x128xf32, #tpu.memory_space<vmem>>, %arg9: memref<8x128xf32, #tpu.memory_space<vmem>>, %arg10: memref<8x8xf32, #tpu.memory_space<vmem>>) attributes {dimension_semantics = [#tpu.dimension_semantics<parallel>, #tpu.dimension_semantics<parallel>, #tpu.dimension_semantics<arbitrary>], iteration_bounds = array<i64: 1, 1, 1>, scalar_prefetch = 0 : i64, scratch_operands = 2 : i64, tpu.core_type = #tpu.core_type<tc>, window_params = [{transform_indices = @transform_0, window_bounds = array<i64: 8, 128>}, {transform_indices = @transform_1, window_bounds = array<i64: 128, 128>}, {pipeline_mode = #tpu.pipeline_mode<synchronous>, transform_indices = @transform_2, window_bounds = array<i64: 128, 8>}, {transform_indices = @transform_3, window_bounds = array<i64: 8, 128>}, {transform_indices = @transform_4, window_bounds = array<i64: 1, 128>}, {transform_indices = @transform_5, window_bounds = array<i64: 8, 128>}]} {
    %c0_i32 = arith.constant 0 : i32
    %0 = arith.cmpi eq, %arg2, %c0_i32 : i32
    %1 = arith.extui %0 : i1 to i32
    %c0_i32_0 = arith.constant 0 : i32
    %2 = arith.cmpi ne, %1, %c0_i32_0 : i32
    scf.if %2 {
      %c0_16 = arith.constant 0 : index
      %c0_17 = arith.constant 0 : index
      %20 = vector.load %arg7[%c0_16, %c0_17] : memref<1x128xf32, #tpu.memory_space<vmem>>, vector<1x128xf32>
      %21 = vector.shape_cast %20 : vector<1x128xf32> to vector<1x128xf32>
      %22 = vector.broadcast %21 : vector<1x128xf32> to vector<8x128xf32>
      %c0_18 = arith.constant 0 : index
      %c0_19 = arith.constant 0 : index
      %23 = vector.load %arg9[%c0_18, %c0_19] : memref<8x128xf32, #tpu.memory_space<vmem>>, vector<8x128xf32>
      tpu.vector_store %arg9[%c0_18, %c0_19], %22 {strides = array<i32>} : memref<8x128xf32, #tpu.memory_space<vmem>>, vector<8x128xf32>,
      %cst_20 = arith.constant 0.000000e+00 : f32
      %24 = vector.broadcast %cst_20 : f32 to vector<8x8xf32>
      %c0_21 = arith.constant 0 : index
      %c0_22 = arith.constant 0 : index
      %25 = vector.load %arg10[%c0_21, %c0_22] : memref<8x8xf32, #tpu.memory_space<vmem>>, vector<8x8xf32>
      tpu.vector_store %arg10[%c0_21, %c0_22], %24 {strides = array<i32>} : memref<8x8xf32, #tpu.memory_space<vmem>>, vector<8x8xf32>,
    } else {
    }
    %c0 = arith.constant 0 : index
    %c0_1 = arith.constant 0 : index
    %3 = vector.load %arg3[%c0, %c0_1] : memref<8x128xf32, #tpu.memory_space<vmem>>, vector<8x128xf32>
    %c0_2 = arith.constant 0 : index
    %c0_3 = arith.constant 0 : index
    %4 = vector.load %arg9[%c0_2, %c0_3] : memref<8x128xf32, #tpu.memory_space<vmem>>, vector<8x128xf32>
    %c0_4 = arith.constant 0 : index
    %c0_5 = arith.constant 0 : index
    %5 = vector.load %arg4[%c0_4, %c0_5] : memref<128x128xf32, #tpu.memory_space<vmem>>, vector<128x128xf32>
    %cst = arith.constant dense<0.000000e+00> : vector<8x128xf32>
    %6 = tpu.matmul %3, %5, %cst {dimension_numbers = #tpu.dot_dimension_numbers<[1], [0], [0], [1], [0, 0, 1, 1], [], []>} : vector<8x128xf32>, vector<128x128xf32>, vector<8x128xf32> -> vector<8x128xf32>
    %7 = arith.addf %4, %6 : vector<8x128xf32>
    %c0_6 = arith.constant 0 : index
    %c0_7 = arith.constant 0 : index
    %8 = vector.load %arg9[%c0_6, %c0_7] : memref<8x128xf32, #tpu.memory_space<vmem>>, vector<8x128xf32>
    tpu.vector_store %arg9[%c0_6, %c0_7], %7 {strides = array<i32>} : memref<8x128xf32, #tpu.memory_space<vmem>>, vector<8x128xf32>,
    %c128_i32 = arith.constant 128 : i32
    %9 = arith.muli %arg2, %c128_i32 : i32
    %10 = tpu.assume_multiple %9, 128 : i32
    %11 = arith.index_cast %10 : i32 to index
    %c0_8 = arith.constant 0 : index
    %12 = vector.load %arg5[%11, %c0_8] : memref<128x8xf32, #tpu.memory_space<vmem>>, vector<128x8xf32>
    %c0_9 = arith.constant 0 : index
    %c0_10 = arith.constant 0 : index
    %13 = vector.load %arg10[%c0_9, %c0_10] : memref<8x8xf32, #tpu.memory_space<vmem>>, vector<8x8xf32>
    %cst_11 = arith.constant dense<0.000000e+00> : vector<8x8xf32>
    %14 = tpu.matmul %3, %12, %cst_11 {dimension_numbers = #tpu.dot_dimension_numbers<[1], [0], [0], [1], [0, 0, 1, 1], [], []>} : vector<8x128xf32>, vector<128x8xf32>, vector<8x8xf32> -> vector<8x8xf32>
    %15 = arith.addf %13, %14 : vector<8x8xf32>
    %c0_12 = arith.constant 0 : index
    %c0_13 = arith.constant 0 : index
    %16 = vector.load %arg10[%c0_12, %c0_13] : memref<8x8xf32, #tpu.memory_space<vmem>>, vector<8x8xf32>
    tpu.vector_store %arg10[%c0_12, %c0_13], %15 {strides = array<i32>} : memref<8x8xf32, #tpu.memory_space<vmem>>, vector<8x8xf32>,
    %c0_i32_14 = arith.constant 0 : i32
    %17 = arith.cmpi eq, %arg2, %c0_i32_14 : i32
    %18 = arith.extui %17 : i1 to i32
    %c0_i32_15 = arith.constant 0 : i32
    %19 = arith.cmpi ne, %18, %c0_i32_15 : i32
    scf.if %19 {
      %c0_16 = arith.constant 0 : index
      %c0_17 = arith.constant 0 : index
      %20 = vector.load %arg6[%c0_16, %c0_17] : memref<8x128xf32, #tpu.memory_space<vmem>>, vector<8x128xf32>
      %c0_18 = arith.constant 0 : index
      %c0_19 = arith.constant 0 : index
      %21 = vector.load %arg9[%c0_18, %c0_19] : memref<8x128xf32, #tpu.memory_space<vmem>>, vector<8x128xf32>
      %c0_20 = arith.constant 0 : index
      %c0_21 = arith.constant 0 : index
      %22 = vector.load %arg10[%c0_20, %c0_21] : memref<8x8xf32, #tpu.memory_space<vmem>>, vector<8x8xf32>
      %cst_22 = arith.constant dense<0.000000e+00> : vector<8x128xf32>
      %23 = tpu.matmul %22, %20, %cst_22 {dimension_numbers = #tpu.dot_dimension_numbers<[1], [0], [0], [1], [0, 0, 1, 1], [], []>} : vector<8x8xf32>, vector<8x128xf32>, vector<8x128xf32> -> vector<8x128xf32>
      %24 = arith.addf %21, %23 : vector<8x128xf32>
      %c0_23 = arith.constant 0 : index
      %c0_24 = arith.constant 0 : index
      %25 = vector.load %arg9[%c0_23, %c0_24] : memref<8x128xf32, #tpu.memory_space<vmem>>, vector<8x128xf32>
      tpu.vector_store %arg9[%c0_23, %c0_24], %24 {strides = array<i32>} : memref<8x128xf32, #tpu.memory_space<vmem>>, vector<8x128xf32>,
      %c0_25 = arith.constant 0 : index
      %c0_26 = arith.constant 0 : index
      %26 = vector.load %arg9[%c0_25, %c0_26] : memref<8x128xf32, #tpu.memory_space<vmem>>, vector<8x128xf32>
      %c0_27 = arith.constant 0 : index
      %c0_28 = arith.constant 0 : index
      %27 = vector.load %arg8[%c0_27, %c0_28] : memref<8x128xf32, #tpu.memory_space<vmem>>, vector<8x128xf32>
      tpu.vector_store %arg8[%c0_27, %c0_28], %26 {strides = array<i32>} : memref<8x128xf32, #tpu.memory_space<vmem>>, vector<8x128xf32>,
    } else {
    }
    return
  }
  func.func @transform_0(%arg0: i32, %arg1: i32, %arg2: i32) -> (i32, i32) {
    %c0_i32 = arith.constant 0 : i32
    return %arg0, %arg2 : i32, i32
  }
  func.func @transform_1(%arg0: i32, %arg1: i32, %arg2: i32) -> (i32, i32) {
    %c0_i32 = arith.constant 0 : i32
    return %arg2, %arg1 : i32, i32
  }
  func.func @transform_2(%arg0: i32, %arg1: i32, %arg2: i32) -> (i32, i32) {
    %c0_i32 = arith.constant 0 : i32
    %c0_i32_0 = arith.constant 0 : i32
    %c0_i32_1 = arith.constant 0 : i32
    return %c0_i32, %c0_i32_0 : i32, i32
  }
  func.func @transform_3(%arg0: i32, %arg1: i32, %arg2: i32) -> (i32, i32) {
    %c0_i32 = arith.constant 0 : i32
    %c0_i32_0 = arith.constant 0 : i32
    return %c0_i32, %arg1 : i32, i32
  }
  func.func @transform_4(%arg0: i32, %arg1: i32, %arg2: i32) -> (i32, i32) {
    %c0_i32 = arith.constant 0 : i32
    %c0_i32_0 = arith.constant 0 : i32
    return %c0_i32, %arg1 : i32, i32
  }
  func.func @transform_5(%arg0: i32, %arg1: i32, %arg2: i32) -> (i32, i32) {
    %c0_i32 = arith.constant 0 : i32
    return %arg0, %arg1 : i32, i32
  }
}

</mosaic_0001>

<bundles_post_ra>
// kernel: tpu_custom_call.1
= control target key start
LH: loop header
LB: loop body
LE: loop exit
PB: predicated region body
PF: predicated region fallthrough
CT: control target
= control target key end

     0   :  { %10 = vsyncpa [#allocation5], 0  ;;  %s673_s0 = inlined_call_operand.vmem [shape: f32[8,128], index: 0, kind: input, shape index: {}]   ;;  %s674_s1 = inlined_call_operand.vmem [shape: f32[128,128], index: 1, kind: input, shape index: {}]   ;;  %s675_s2 = inlined_call_operand.vmem [shape: f32[128,8], index: 2, kind: input, shape index: {}]   ;;  %s676_s3 = inlined_call_operand.hbm [shape: f32[8,128], index: 3, kind: input, shape index: {}]   ;;  %s677_s4 = inlined_call_operand.vmem [shape: f32[1,128], index: 4, kind: input, shape index: {}]   ;;  %s678_s5 = inlined_call_operand.hbm [shape: f32[8,128], index: 5, kind: output, shape index: {}]  }
   0x1   :  { %11 = vsyncpa [#allocation6], 0  ;;  %s488_s18 = smov [#allocation4]  }
   0x2   :  { %s24_s19 = sshll.u32 %s488_s18, 4  ;;  %s25_s19 = int_to_ptr.vmem [resolvable:$true] %s24_s19 }
   0x3   :  { %s452_s20 = scalar_lea.vmem %s25_s19, 128  ;;  %p457_p1 = scmp.lt.s32.totalorder %s25_s19, %s25_s19 }
   0x4   :  { %p453_p0 = scmp.ne.s32.totalorder %s25_s19, %s452_s20  ;;  %p458_p2 = scmp.lt.s32.totalorder %s452_s20, %s452_s20 }
   0x6   :  { %p459_p3 = por %p458_p2, %p457_p1 }
   0x8   :  { %p460_p4 = pnand %p459_p3, %p453_p0 }
   0xa   :  { %463 = shalt.err (!%p460_p4)
}
   0xb   :  { %27 = dma.hbm_to_vmem [thread:$0]  %s676_s3, 128, %s25_s19, [#allocation5]  }
   0xc   :  { %484 = dma.done.wait [#allocation5], 128  }
   0xd   :  { %485 = vsyncadd [#allocation5], 4294967168  ;;  %vm45_vm0 = vcmask 64512   ;;  %v489_v0 = vmov 0.0   ;;  %vm490_vm1 = vmmov 0   ;;  %v154_v1 = vld [vmem:[%s675_s2 + $0x78] sm:$0xff] }
   0xe   :  { %400 = vmatprep.subr.mxu1 %v489_v0  ;;  %432 = vmatprep.mubr.msk.f32.mxu1 %vm490_vm1, %v489_v0  ;;  %46 = vst.msk [vmem:[#allocation3] sm:$0xff] %vm45_vm0, %v489_v0  ;;  %v153_v2 = vld [vmem:[%s675_s2 + $0x70] sm:$0xff]  ;;  %v152_v3 = vld [vmem:[%s675_s2 + $0x68] sm:$0xff]  ;;  %v151_v4 = vld [vmem:[%s675_s2 + $0x60] sm:$0xff]  ;;  %s491_s10 = smov [#allocation7]  }
   0xf   :  { %365 = vmatprep.subr.mxu0 %v489_v0  ;;  %397 = vmatprep.mubr.msk.f32.mxu0 %vm490_vm1, %v489_v0  ;;  %v64_v5 = vld [vmem:[%s674_s1 + $0x78] sm:$0xff]  ;;  %v63_v7 = vld [vmem:[%s674_s1 + $0x70] sm:$0xff]  ;;  %v62_v8 = vld [vmem:[%s674_s1 + $0x68] sm:$0xff]  ;;  %s318_s11 = sshll.u32 %s491_s10, 4  ;;  %s319_s11 = int_to_ptr.vmem [resolvable:$true] %s318_s11 }
  0x10   :  { %401 = vmatpush3.msra.mxu1 %v154_v1  ;;  %v150_v6 = vld [vmem:[%s675_s2 + $0x58] sm:$0xff]  ;;  %366 = vmatpush3.msra.mxu0 %v64_v5  ;;  %v149_v9 = vld [vmem:[%s675_s2 + $0x50] sm:$0xff]  ;;  %v61_v10 = vld [vmem:[%s674_s1 + $0x60] sm:$0xff]  ;;  %s464_s12 = scalar_lea.vmem %s319_s11, 128  ;;  %p469_p6 = scmp.lt.s32.totalorder %s319_s11, %s319_s11 }
  0x11   :  { %402 = vmatprep.subr.mxu1 %v489_v0  ;;  %367 = vmatprep.subr.mxu0 %v489_v0  ;;  %v148_v11 = vld [vmem:[%s675_s2 + $0x48] sm:$0xff]  ;;  %v60_v12 = vld [vmem:[%s674_s1 + $0x58] sm:$0xff]  ;;  %v147_v13 = vld [vmem:[%s675_s2 + $0x40] sm:$0xff]  ;;  %p465_p5 = scmp.ne.s32.totalorder %s319_s11, %s464_s12  ;;  %p470_p7 = scmp.lt.s32.totalorder %s464_s12, %s464_s12 }
  0x12   :  { %403 = vmatpush3.msra.mxu1 %v153_v2  ;;  %368 = vmatpush3.msra.mxu0 %v63_v7  ;;  %v59_v14 = vld [vmem:[%s674_s1 + $0x50] sm:$0xff]  ;;  %v146_v15 = vld [vmem:[%s675_s2 + $0x38] sm:$0xff]  ;;  %v58_v16 = vld [vmem:[%s674_s1 + $0x48] sm:$0xff] }
  0x13   :  { %404 = vmatprep.subr.mxu1 %v489_v0  ;;  %369 = vmatprep.subr.mxu0 %v489_v0  ;;  %v145_v17 = vld [vmem:[%s675_s2 + $0x30] sm:$0xff]  ;;  %v57_v18 = vld [vmem:[%s674_s1 + $0x40] sm:$0xff]  ;;  %v144_v19 = vld [vmem:[%s675_s2 + $0x28] sm:$0xff]  ;;  %p471_p8 = por %p470_p7, %p469_p6 }
  0x14   :  { %405 = vmatpush3.msra.mxu1 %v152_v3  ;;  %370 = vmatpush3.msra.mxu0 %v62_v8  ;;  %v56_v20 = vld [vmem:[%s674_s1 + $0x38] sm:$0xff]  ;;  %v143_v21 = vld [vmem:[%s675_s2 + $0x20] sm:$0xff]  ;;  %v55_v22 = vld [vmem:[%s674_s1 + $0x30] sm:$0xff] }
  0x15   :  { %406 = vmatprep.subr.mxu1 %v489_v0  ;;  %371 = vmatprep.subr.mxu0 %v489_v0  ;;  %v142_v23 = vld [vmem:[%s675_s2 + $0x18] sm:$0xff]  ;;  %v54_v24 = vld [vmem:[%s674_s1 + $0x28] sm:$0xff]  ;;  %v141_v25 = vld [vmem:[%s675_s2 + $0x10] sm:$0xff]  ;;  %p472_p9 = pnand %p471_p8, %p465_p5 }
  0x16   :  { %407 = vmatpush3.msra.mxu1 %v151_v4  ;;  %372 = vmatpush3.msra.mxu0 %v61_v10  ;;  %v53_v26 = vld [vmem:[%s674_s1 + $0x20] sm:$0xff]  ;;  %v140_v27 = vld [vmem:[%s675_s2 + $0x8] sm:$0xff]  ;;  %v52_v28 = vld [vmem:[%s674_s1 + $0x18] sm:$0xff] }
  0x17   :  { %408 = vmatprep.subr.mxu1 %v489_v0  ;;  %373 = vmatprep.subr.mxu0 %v489_v0  ;;  %v139_v29 = vld [vmem:[%s675_s2] sm:$0xff]  ;;  %v51_v31 = vld [vmem:[%s674_s1 + $0x10] sm:$0xff]  ;;  %v50_v32 = vld [vmem:[%s674_s1 + $0x8] sm:$0xff] }
  0x18   :  { %409 = vmatpush3.msra.mxu1 %v150_v6  ;;  %374 = vmatpush3.msra.mxu0 %v60_v12  ;;  %v47_v30 = vld [vmem:[%s673_s0] sm:$0xff]  ;;  %v232_v34 = vld [vmem:[#allocation4] sm:$0xff] }
  0x19   :  { %410 = vmatprep.subr.mxu1 %v489_v0  ;;  %375 = vmatprep.subr.mxu0 %v489_v0  ;;  %v49_v33 = vld [vmem:[%s674_s1] sm:$0xff] }
  0x1a   :  { %411 = vmatpush3.msra.mxu1 %v149_v9  ;;  %376 = vmatpush3.msra.mxu0 %v59_v14  ;;  %v155_v35 = vld [vmem:[#allocation3] sm:$0xff] }
  0x1b   :  { %412 = vmatprep.subr.mxu1 %v489_v0  ;;  %377 = vmatprep.subr.mxu0 %v489_v0  ;;  %v327_v42 = vld [vmem:[%s677_s4] ss:$0 sm:$0xff] }
  0x1c   :  { %413 = vmatpush3.msra.mxu1 %v148_v11  ;;  %378 = vmatpush3.msra.mxu0 %v58_v16 }
  0x1d   :  { %414 = vmatprep.subr.mxu1 %v489_v0  ;;  %379 = vmatprep.subr.mxu0 %v489_v0 }
  0x1e   :  { %415 = vmatpush3.msra.mxu1 %v147_v13  ;;  %380 = vmatpush3.msra.mxu0 %v57_v18 }
  0x1f   :  { %416 = vmatprep.subr.mxu1 %v489_v0  ;;  %381 = vmatprep.subr.mxu0 %v489_v0 }
  0x20   :  { %417 = vmatpush3.msra.mxu1 %v146_v15  ;;  %382 = vmatpush3.msra.mxu0 %v56_v20 }
  0x21   :  { %418 = vmatprep.subr.mxu1 %v489_v0  ;;  %383 = vmatprep.subr.mxu0 %v489_v0 }
  0x22   :  { %419 = vmatpush3.msra.mxu1 %v145_v17  ;;  %384 = vmatpush3.msra.mxu0 %v55_v22 }
  0x23   :  { %420 = vmatprep.subr.mxu1 %v489_v0  ;;  %385 = vmatprep.subr.mxu0 %v489_v0 }
  0x24   :  { %421 = vmatpush3.msra.mxu1 %v144_v19  ;;  %386 = vmatpush3.msra.mxu0 %v54_v24 }
  0x25   :  { %422 = vmatprep.subr.mxu1 %v489_v0  ;;  %387 = vmatprep.subr.mxu0 %v489_v0 }
  0x26   :  { %423 = vmatpush3.msra.mxu1 %v143_v21  ;;  %388 = vmatpush3.msra.mxu0 %v53_v26 }
  0x27   :  { %424 = vmatprep.subr.mxu1 %v489_v0  ;;  %389 = vmatprep.subr.mxu0 %v489_v0 }
  0x28   :  { %425 = vmatpush3.msra.mxu1 %v142_v23  ;;  %390 = vmatpush3.msra.mxu0 %v52_v28 }
  0x29   :  { %426 = vmatprep.subr.mxu1 %v489_v0  ;;  %391 = vmatprep.subr.mxu0 %v489_v0 }
  0x2a   :  { %427 = vmatpush3.msra.mxu1 %v141_v25  ;;  %392 = vmatpush3.msra.mxu0 %v51_v31 }
  0x2b   :  { %428 = vmatprep.subr.mxu1 %v489_v0  ;;  %393 = vmatprep.subr.mxu0 %v489_v0 }
  0x2c   :  { %429 = vmatpush3.msra.mxu1 %v140_v27  ;;  %394 = vmatpush3.msra.mxu0 %v50_v32 }
  0x2d   :  { %430 = vmatprep.subr.mxu1 %v489_v0  ;;  %395 = vmatprep.subr.mxu0 %v489_v0 }
  0x2e   :  { %431 = vmatpush3.msra.mxu1 %v139_v29  ;;  %396 = vmatpush3.msra.mxu0 %v49_v33 }
  0x2f   :  { %433 = vmatmul.mubr.f32.vlgmr.msra.gmra.mxu1 %v47_v30  ;;  %398 = vmatmul.mubr.f32.vlgmr.msra.gmra.mxu0 %v47_v30 }
  0x30   :  { %435 = vmatprep.subr.mxu0 %v489_v0  ;;  %437 = vmatprep.mubr.msk.f32.mxu0 %vm490_vm1, %v489_v0 }
  0x31   :  { %436 = vmatpush3.msra.mxu0 %v232_v34 }
  0xef   :  { %v222_v36 = vpop.f32.mrf.mxu1  ;;  %v131_v40 = vpop.f32.mrf.mxu0 }
  0xf0   :  { %v226_v37 = vadd.f32 %v222_v36, %v155_v35  ;;  %v135_v43 = vadd.f32 %v327_v42, %v131_v40 }
  0xf1   :  { %v434_v38 = vpop.f32.mrf.mxu1  ;;  %v399_v41 = vpop.f32.mrf.mxu0 }
  0xf2   :  { %228 = vst.msk [vmem:[#allocation3] sm:$0xff] %vm45_vm0, %v226_v37 }
  0xf9   :  { %v234_v39 = vld [vmem:[#allocation3] sm:$0xff] }
  0xfa   :  { %438 = vmatmul.mubr.msk.f32.vlgmr.msra.gmra.mxu0 %vm45_vm0, %v234_v39 }
 0x1ba   :  { %v304_v44 = vpop.f32.mrf.mxu0 }
 0x1bb   :  { %v308_v45 = vadd.f32 %v304_v44, %v135_v43 }
 0x1bc   :  { %v439_v46 = vpop.f32.mrf.mxu0 }
 0x1bd   :  { %311 = vst [vmem:[#allocation7] sm:$0xff] %v308_v45 }
 0x1be   :  { %475 = shalt.err (!%p472_p9)
}
 0x1bf   :  { %321 = dma.vmem_to_hbm [thread:$0]  %s319_s11, 128, %s678_s5, [#allocation6]  }
 0x1c0   :  { %486 = dma.done.wait [#allocation6], 128  }
 0x1c1   :  { %487 = vsyncadd [#allocation6], 4294967168 }
 0x1c2   :  { %325 = vsyncpa [#allocation5], 1 }
 0x1c3   :  { %326 = vsyncpa [#allocation6], 1 }

</bundles_post_ra>
